<compile_context>
chip_gen: v7x
topology: tpu7x:2x2x1
jax: 0.10.0
libtpu: 0.0.40
codegen_flags: <defaults>
</compile_context>

<pallas_src>
import math

import jax
import jax.numpy as jnp
from jax.experimental import pallas as pl
from jax.experimental.pallas import tpu as pltpu


def _combiner_kernel(z_ref, h_rnn_ref, w1_ref, b1_ref, w23_ref, b23_ref,
                     loc_ref, scale_ref):
    # hidden projection + tanh (MXU matmul, EUP tanh)
    h_latent = jnp.tanh(
        jnp.dot(z_ref[...], w1_ref[...], preferred_element_type=jnp.float32)
        + b1_ref[...]
    )
    # combine with RNN hidden state; the 0.5 scale is folded into w23
    h_combined = h_latent + h_rnn_ref[...].astype(jnp.float32)

    # fused loc|scale head: one [TB, H] @ [H, 2*z] matmul (lane-dense output)
    out = (
        jnp.dot(h_combined, w23_ref[...], preferred_element_type=jnp.float32)
        + b23_ref[...]
    )

    z = loc_ref.shape[-1]
    loc_ref[...] = out[:, :z].astype(loc_ref.dtype)
    # numerically stable softplus: log(1 + exp(x)) = logaddexp(x, 0)
    scale_ref[...] = jnp.logaddexp(out[:, z:], 0.0).astype(scale_ref.dtype)


def _pick_batch_tile(B):
    # MXU-friendly row tile: up to 256 rows (v6e/v7x MXU is 2x256^2; 256 is
    # also a fine multiple of v5e's 128). Tiny per-tile footprint
    # (~224 f32/row -> well under v7x's 64 MiB VMEM even double-buffered).
    max_tb = 256
    if B <= max_tb:
        return max(8, -(-B // 8) * 8)   # round up to sublane multiple of 8
    return max_tb


def combiner_forward(z_t_1, h_rnn, params, *, tb=None):
    """Run the Combiner forward pass in one Pallas kernel.

    z_t_1:  [B, z_dim]
    h_rnn:  [B, H]   (H = 2*rnn_dim)
    params: dict with w1 [z_dim, H], b1 [1, H], w2 [H, z_dim], b2 [1, z_dim],
            w3 [H, z_dim], b3 [1, z_dim]
    returns (loc [B, z_dim], scale [B, z_dim])
    """
    B, z_dim = z_t_1.shape
    H = h_rnn.shape[-1]
    dtype = z_t_1.dtype

    if tb is None:
        tb = _pick_batch_tile(B)
    grid = (pl.cdiv(B, tb),)

    # Fused head params (0.5 combine scale folded into the weights, not biases).
    # Constant-folds under jit; negligible eagerly for these sizes.
    w23 = jnp.concatenate([0.5 * params["w2"], 0.5 * params["w3"]], axis=1)
    b23 = jnp.concatenate([params["b2"], params["b3"]], axis=1)

    out_shapes = (
        jax.ShapeDtypeStruct((B, z_dim), dtype),  # loc
        jax.ShapeDtypeStruct((B, z_dim), dtype),  # scale
    )

    # Activations tiled along batch; weights/biases resident (constant index_map).
    in_specs = [
        pl.BlockSpec((tb, z_dim), lambda i: (i, 0)),      # z_t_1
        pl.BlockSpec((tb, H), lambda i: (i, 0)),          # h_rnn
        pl.BlockSpec((z_dim, H), lambda i: (0, 0)),       # w1
        pl.BlockSpec((1, H), lambda i: (0, 0)),           # b1
        pl.BlockSpec((H, 2 * z_dim), lambda i: (0, 0)),   # w23
        pl.BlockSpec((1, 2 * z_dim), lambda i: (0, 0)),   # b23
    ]
    out_specs = (
        pl.BlockSpec((tb, z_dim), lambda i: (i, 0)),      # loc
        pl.BlockSpec((tb, z_dim), lambda i: (i, 0)),      # scale
    )

    itemsize = jnp.dtype(dtype).itemsize
    cost = pl.CostEstimate(
        flops=2 * B * (z_dim * H + H * 2 * z_dim),
        transcendentals=B * (H + z_dim),
        bytes_accessed=itemsize * (
            B * z_dim + B * H                    # activations in
            + z_dim * H + H + H * 2 * z_dim + 2 * z_dim  # params
            + 2 * B * z_dim                      # outputs
        ),
    )

    loc, scale = pl.pallas_call(
        _combiner_kernel,
        out_shape=out_shapes,
        grid=grid,
        in_specs=in_specs,
        out_specs=out_specs,
        compiler_params=pltpu.CompilerParams(
            dimension_semantics=("parallel",)),
        cost_estimate=cost,
    )(z_t_1, h_rnn, params["w1"], params["b1"], w23, b23)
    return loc, scale

    # TODO(synk): if this Combiner is called once per time step inside a
    # lax.scan, amortize dispatch/weight DMA by batching time into B (or an
    # extra "arbitrary" grid axis) at the caller — biggest wall-clock lever.


def init_combiner_params(key, z_dim, rnn_dim, dtype=jnp.float32):
    """Deterministic init mirroring torch.nn.Linear default (uniform +/- 1/sqrt(fan_in)).

    Weights are stored as [in_features, out_features] (pre-transposed for x @ W).
    Biases are stored as [1, out_features] for TPU-friendly 2D broadcasting.
    """
    hidden = 2 * rnn_dim
    k1, k2, k3, k4, k5, k6 = jax.random.split(key, 6)

    def uniform(k, shape, fan_in):
        bound = 1.0 / math.sqrt(fan_in)
        return jax.random.uniform(k, shape, dtype, minval=-bound, maxval=bound)

    return {
        # lin_z_to_hidden: Linear(z_dim, 2*rnn_dim)
        "w1": uniform(k1, (z_dim, hidden), z_dim),
        "b1": uniform(k2, (1, hidden), z_dim),
        # lin_hidden_to_loc: Linear(2*rnn_dim, z_dim)
        "w2": uniform(k3, (hidden, z_dim), hidden),
        "b2": uniform(k4, (1, z_dim), hidden),
        # lin_hidden_to_scale: Linear(2*rnn_dim, z_dim)
        "w3": uniform(k5, (hidden, z_dim), hidden),
        "b3": uniform(k6, (1, z_dim), hidden),
    }


def combiner_reference(z_t_1, h_rnn, params):
    """Pure-JAX reference for correctness checking (unfused, original form)."""
    h_latent = jnp.tanh(z_t_1 @ params["w1"] + params["b1"])
    h_combined = 0.5 * (h_latent + h_rnn)
    loc = h_combined @ params["w2"] + params["b2"]
    scale = jax.nn.softplus(h_combined @ params["w3"] + params["b3"])
    return loc, scale


if __name__ == "__main__":
    B, Z_DIM, RNN_DIM = 16, 32, 64          # hidden = 2*rnn_dim = 128
    HIDDEN = 2 * RNN_DIM

    key = jax.random.PRNGKey(0)
    k_params, k_z, k_h = jax.random.split(key, 3)

    params = init_combiner_params(k_params, Z_DIM, RNN_DIM)
    z_t_1 = jax.random.normal(k_z, (B, Z_DIM), jnp.float32)
    h_rnn = jax.random.normal(k_h, (B, HIDDEN), jnp.float32)

    loc_ref, scale_ref = combiner_reference(z_t_1, h_rnn, params)

    # Default (single MXU-friendly tile covering the batch).
    loc, scale = combiner_forward(z_t_1, h_rnn, params)
    loc, scale = jax.block_until_ready((loc, scale))
    assert loc.shape == (B, Z_DIM) and scale.shape == (B, Z_DIM)
    assert jnp.allclose(loc, loc_ref, atol=1e-5, rtol=1e-5)
    assert jnp.allclose(scale, scale_ref, atol=1e-5, rtol=1e-5)
    assert bool(jnp.all(scale > 0))

    # Smaller tile to exercise a multi-step batch grid (pipelined path).
    loc2, scale2 = combiner_forward(z_t_1, h_rnn, params, tb=8)
    loc2, scale2 = jax.block_until_ready((loc2, scale2))
    assert jnp.allclose(loc2, loc_ref, atol=1e-5, rtol=1e-5)
    assert jnp.allclose(scale2, scale_ref, atol=1e-5, rtol=1e-5)

    print("KERNEL_OK")
</pallas_src>

<mosaic_0001>
module attributes {stable_mosaic.version = 11 : i64} {
  func.func @_combiner_kernel(%arg0: i32, %arg1: memref<16x32xf32, #tpu.memory_space<vmem>>, %arg2: memref<16x128xf32, #tpu.memory_space<vmem>>, %arg3: memref<32x128xf32, #tpu.memory_space<vmem>>, %arg4: memref<1x128xf32, #tpu.memory_space<vmem>>, %arg5: memref<128x64xf32, #tpu.memory_space<vmem>>, %arg6: memref<1x64xf32, #tpu.memory_space<vmem>>, %arg7: memref<16x32xf32, #tpu.memory_space<vmem>>, %arg8: memref<16x32xf32, #tpu.memory_space<vmem>>) attributes {dimension_semantics = [#tpu.dimension_semantics<parallel>], iteration_bounds = array<i64: 1>, scalar_prefetch = 0 : i64, scratch_operands = 0 : i64, tpu.core_type = #tpu.core_type<tc>, window_params = [{transform_indices = @transform_0, window_bounds = array<i64: 16, 32>}, {transform_indices = @transform_1, window_bounds = array<i64: 16, 128>}, {pipeline_mode = #tpu.pipeline_mode<synchronous>, transform_indices = @transform_2, window_bounds = array<i64: 32, 128>}, {pipeline_mode = #tpu.pipeline_mode<synchronous>, transform_indices = @transform_3, window_bounds = array<i64: 1, 128>}, {pipeline_mode = #tpu.pipeline_mode<synchronous>, transform_indices = @transform_4, window_bounds = array<i64: 128, 64>}, {pipeline_mode = #tpu.pipeline_mode<synchronous>, transform_indices = @transform_5, window_bounds = array<i64: 1, 64>}, {transform_indices = @transform_6, window_bounds = array<i64: 16, 32>}, {transform_indices = @transform_7, window_bounds = array<i64: 16, 32>}]} {
    %c0 = arith.constant 0 : index
    %c0_0 = arith.constant 0 : index
    %0 = vector.load %arg1[%c0, %c0_0] : memref<16x32xf32, #tpu.memory_space<vmem>>, vector<16x32xf32>
    %c0_1 = arith.constant 0 : index
    %c0_2 = arith.constant 0 : index
    %1 = vector.load %arg3[%c0_1, %c0_2] : memref<32x128xf32, #tpu.memory_space<vmem>>, vector<32x128xf32>
    %cst = arith.constant dense<0.000000e+00> : vector<16x128xf32>
    %2 = tpu.matmul %0, %1, %cst {dimension_numbers = #tpu.dot_dimension_numbers<[1], [0], [0], [1], [0, 0, 1, 1], [], []>} : vector<16x32xf32>, vector<32x128xf32>, vector<16x128xf32> -> vector<16x128xf32>
    %c0_3 = arith.constant 0 : index
    %c0_4 = arith.constant 0 : index
    %3 = vector.load %arg4[%c0_3, %c0_4] : memref<1x128xf32, #tpu.memory_space<vmem>>, vector<1x128xf32>
    %4 = vector.broadcast %3 : vector<1x128xf32> to vector<16x128xf32>
    %5 = arith.addf %2, %4 : vector<16x128xf32>
    %6 = math.tanh %5 : vector<16x128xf32>
    %c0_5 = arith.constant 0 : index
    %c0_6 = arith.constant 0 : index
    %7 = vector.load %arg2[%c0_5, %c0_6] : memref<16x128xf32, #tpu.memory_space<vmem>>, vector<16x128xf32>
    %8 = arith.addf %6, %7 : vector<16x128xf32>
    %c0_7 = arith.constant 0 : index
    %c0_8 = arith.constant 0 : index
    %9 = vector.load %arg5[%c0_7, %c0_8] : memref<128x64xf32, #tpu.memory_space<vmem>>, vector<128x64xf32>
    %cst_9 = arith.constant dense<0.000000e+00> : vector<16x64xf32>
    %10 = tpu.matmul %8, %9, %cst_9 {dimension_numbers = #tpu.dot_dimension_numbers<[1], [0], [0], [1], [0, 0, 1, 1], [], []>} : vector<16x128xf32>, vector<128x64xf32>, vector<16x64xf32> -> vector<16x64xf32>
    %c0_10 = arith.constant 0 : index
    %c0_11 = arith.constant 0 : index
    %11 = vector.load %arg6[%c0_10, %c0_11] : memref<1x64xf32, #tpu.memory_space<vmem>>, vector<1x64xf32>
    %12 = vector.broadcast %11 : vector<1x64xf32> to vector<16x64xf32>
    %13 = arith.addf %10, %12 : vector<16x64xf32>
    %14 = vector.extract_strided_slice %13 {offsets = [0, 0], sizes = [16, 32], strides = [1, 1]} : vector<16x64xf32> to vector<16x32xf32>
    %c0_12 = arith.constant 0 : index
    %c0_13 = arith.constant 0 : index
    %15 = vector.load %arg7[%c0_12, %c0_13] : memref<16x32xf32, #tpu.memory_space<vmem>>, vector<16x32xf32>
    tpu.vector_store %arg7[%c0_12, %c0_13], %14 {strides = array<i32>} : memref<16x32xf32, #tpu.memory_space<vmem>>, vector<16x32xf32>,
    %16 = vector.extract_strided_slice %13 {offsets = [0, 32], sizes = [16, 32], strides = [1, 1]} : vector<16x64xf32> to vector<16x32xf32>
    %cst_14 = arith.constant 0.000000e+00 : f32
    %17 = vector.broadcast %cst_14 : f32 to vector<16x32xf32>
    %18 = arith.maximumf %16, %17 : vector<16x32xf32>
    %19 = vector.broadcast %cst_14 : f32 to vector<16x32xf32>
    %20 = arith.subf %16, %19 : vector<16x32xf32>
    %21 = arith.cmpf one, %20, %20 : vector<16x32xf32>
    %22 = vector.broadcast %cst_14 : f32 to vector<16x32xf32>
    %23 = arith.addf %16, %22 : vector<16x32xf32>
    %24 = math.absf %20 : vector<16x32xf32>
    %cst_15 = arith.constant 0.000000e+00 : f32
    %25 = vector.broadcast %cst_15 : f32 to vector<16x32xf32>
    %26 = arith.subf %25, %24 : vector<16x32xf32>
    %27 = math.exp %26 : vector<16x32xf32>
    %28 = math.log1p %27 : vector<16x32xf32>
    %29 = arith.addf %18, %28 : vector<16x32xf32>
    %30 = arith.select %21, %23, %29 : vector<16x32xi1>, vector<16x32xf32>
    %c0_16 = arith.constant 0 : index
    %c0_17 = arith.constant 0 : index
    %31 = vector.load %arg8[%c0_16, %c0_17] : memref<16x32xf32, #tpu.memory_space<vmem>>, vector<16x32xf32>
    tpu.vector_store %arg8[%c0_16, %c0_17], %30 {strides = array<i32>} : memref<16x32xf32, #tpu.memory_space<vmem>>, vector<16x32xf32>,
    return
  }
  func.func @transform_0(%arg0: i32) -> (i32, i32) {
    %c0_i32 = arith.constant 0 : i32
    %c0_i32_0 = arith.constant 0 : i32
    return %arg0, %c0_i32 : i32, i32
  }
  func.func @transform_1(%arg0: i32) -> (i32, i32) {
    %c0_i32 = arith.constant 0 : i32
    %c0_i32_0 = arith.constant 0 : i32
    return %arg0, %c0_i32 : i32, i32
  }
  func.func @transform_2(%arg0: i32) -> (i32, i32) {
    %c0_i32 = arith.constant 0 : i32
    %c0_i32_0 = arith.constant 0 : i32
    %c0_i32_1 = arith.constant 0 : i32
    return %c0_i32, %c0_i32_0 : i32, i32
  }
  func.func @transform_3(%arg0: i32) -> (i32, i32) {
    %c0_i32 = arith.constant 0 : i32
    %c0_i32_0 = arith.constant 0 : i32
    %c0_i32_1 = arith.constant 0 : i32
    return %c0_i32, %c0_i32_0 : i32, i32
  }
  func.func @transform_4(%arg0: i32) -> (i32, i32) {
    %c0_i32 = arith.constant 0 : i32
    %c0_i32_0 = arith.constant 0 : i32
    %c0_i32_1 = arith.constant 0 : i32
    return %c0_i32, %c0_i32_0 : i32, i32
  }
  func.func @transform_5(%arg0: i32) -> (i32, i32) {
    %c0_i32 = arith.constant 0 : i32
    %c0_i32_0 = arith.constant 0 : i32
    %c0_i32_1 = arith.constant 0 : i32
    return %c0_i32, %c0_i32_0 : i32, i32
  }
  func.func @transform_6(%arg0: i32) -> (i32, i32) {
    %c0_i32 = arith.constant 0 : i32
    %c0_i32_0 = arith.constant 0 : i32
    return %arg0, %c0_i32 : i32, i32
  }
  func.func @transform_7(%arg0: i32) -> (i32, i32) {
    %c0_i32 = arith.constant 0 : i32
    %c0_i32_0 = arith.constant 0 : i32
    return %arg0, %c0_i32 : i32, i32
  }
}

</mosaic_0001>

<bundles_post_ra>
// kernel: tpu_custom_call.1
= control target key start
LH: loop header
LB: loop body
LE: loop exit
PB: predicated region body
PF: predicated region fallthrough
CT: control target
= control target key end

     0   :  { %13 = vsyncpa [#allocation3], 0  ;;  %vm40_vm0 = vcmask 261120   ;;  %s652_s0 = inlined_call_operand.vmem [shape: f32[16,32], index: 0, kind: input, shape index: {}]   ;;  %s653_s1 = inlined_call_operand.vmem [shape: f32[16,128], index: 1, kind: input, shape index: {}]   ;;  %s654_s2 = inlined_call_operand.vmem [shape: f32[32,128], index: 2, kind: input, shape index: {}]   ;;  %s655_s3 = inlined_call_operand.vmem [shape: f32[1,128], index: 3, kind: input, shape index: {}]   ;;  %s656_s4 = inlined_call_operand.vmem [shape: f32[128,64], index: 4, kind: input, shape index: {}]   ;;  %s657_s5 = inlined_call_operand.vmem [shape: f32[1,64], index: 5, kind: input, shape index: {}]   ;;  %s658_s6 = inlined_call_operand.hbm [shape: f32[16,32], index: 6, kind: output, shape index: {0}]   ;;  %s659_s7 = inlined_call_operand.hbm [shape: f32[16,32], index: 7, kind: output, shape index: {1}]  }
   0x1   :  { %v29_v0 = vld [vmem:[%s654_s2] sm:$0xff]  ;;  %v30_v1 = vld [vmem:[%s654_s2 + $0x8] sm:$0xff]  ;;  %v31_v2 = vld [vmem:[%s654_s2 + $0x10] sm:$0xff] }
   0x2   :  { %v380_v3 = vpack.c.bf16 %v30_v1, %v29_v0  ;;  %v32_v4 = vld [vmem:[%s654_s2 + $0x18] sm:$0xff]  ;;  %v27_v5 = vld [vmem:[%s652_s0] sm:$0xff]  ;;  %v129_v8 = vld [vmem:[%s656_s4 + $0x8] sm:$0xff] }
   0x3   :  { %v384_v6 = vpack.c.bf16 %v32_v4, %v31_v2  ;;  %342 = vmatprep.mubr.msk.f32.mxu0 %vm40_vm0, %v27_v5  ;;  %v128_v7 = vld [vmem:[%s656_s4] sm:$0xff]  ;;  %v130_v9 = vld [vmem:[%s656_s4 + $0x10] sm:$0xff]  ;;  %v131_v11 = vld [vmem:[%s656_s4 + $0x18] sm:$0xff] }
   0x4   :  { %381 = vmatprep.subr.bf16.mxu0 %v380_v3  ;;  %v388_v10 = vpack.c.bf16 %v129_v8, %v128_v7  ;;  %v392_v12 = vpack.c.bf16 %v131_v11, %v130_v9  ;;  %v132_v13 = vld [vmem:[%s656_s4 + $0x20] sm:$0xff]  ;;  %v133_v14 = vld [vmem:[%s656_s4 + $0x28] sm:$0xff] }
   0x5   :  { %383 = vmatpush3.bf16.msra.mxu0 %v380_v3 }
   0x6   :  { %14 = vsyncpa [#allocation5], 0  ;;  %385 = vmatprep.subr.bf16.mxu0 %v384_v6  ;;  %389 = vmatprep.subr.bf16.mxu1 %v388_v10  ;;  %v396_v15 = vpack.c.bf16 %v133_v14, %v132_v13  ;;  %v28_v16 = vld [vmem:[%s652_s0 + $0x8] sm:$0xff]  ;;  %v134_v17 = vld [vmem:[%s656_s4 + $0x30] sm:$0xff] }
   0x7   :  { %391 = vmatpush3.bf16.msra.mxu1 %v388_v10  ;;  %v135_v18 = vld [vmem:[%s656_s4 + $0x38] sm:$0xff]  ;;  %v136_v20 = vld [vmem:[%s656_s4 + $0x40] sm:$0xff]  ;;  %v137_v21 = vld [vmem:[%s656_s4 + $0x48] sm:$0xff] }
   0x8   :  { %393 = vmatprep.subr.bf16.mxu1 %v392_v12  ;;  %v400_v19 = vpack.c.bf16 %v135_v18, %v134_v17  ;;  %v404_v22 = vpack.c.bf16 %v137_v21, %v136_v20  ;;  %v138_v23 = vld [vmem:[%s656_s4 + $0x50] sm:$0xff]  ;;  %v139_v24 = vld [vmem:[%s656_s4 + $0x58] sm:$0xff]  ;;  %v140_v26 = vld [vmem:[%s656_s4 + $0x60] sm:$0xff] }
   0x9   :  { %387 = vmatpush3.bf16.msra.mxu0 %v384_v6  ;;  %v408_v25 = vpack.c.bf16 %v139_v24, %v138_v23  ;;  %v141_v27 = vld [vmem:[%s656_s4 + $0x68] sm:$0xff]  ;;  %v142_v29 = vld [vmem:[%s656_s4 + $0x70] sm:$0xff]  ;;  %v143_v30 = vld [vmem:[%s656_s4 + $0x78] sm:$0xff] }
   0xa   :  { %v412_v28 = vpack.c.bf16 %v141_v27, %v140_v26  ;;  %v416_v31 = vpack.c.bf16 %v143_v30, %v142_v29  ;;  %v306_v32 = vld [vmem:[%s655_s3] ss:$0 sm:$0xff]  ;;  %v125_v39 = vld [vmem:[%s653_s1 + $0x8] sm:$0xff] }
   0xb   :  { %395 = vmatpush3.bf16.msra.mxu1 %v392_v12  ;;  %v124_v37 = vld [vmem:[%s653_s1] sm:$0xff]  ;;  %s485_s1 = smov [#allocation2]  }
   0xc   :  { %343 = vmatmul.mubr.msk.f32.vlgmr.msra.gmra.mrb[0].mxu0 %vm40_vm0, %v28_v16  ;;  %397 = vmatprep.subr.bf16.mxu1 %v396_v15  ;;  %v309_v43 = vld [vmem:[%s657_s5] ss:$0 sm:$0xff]  ;;  %s279_s5 = sshll.u32 %s485_s1, 4  ;;  %s280_s5 = int_to_ptr.vmem [resolvable:$true] %s279_s5 }
   0xd   :  { %s437_s25 = scalar_lea.vmem %s280_s5, 256  ;;  %p442_p1 = scmp.lt.s32.totalorder %s280_s5, %s280_s5 }
   0xe   :  { %p438_p0 = scmp.ne.s32.totalorder %s280_s5, %s437_s25  ;;  %p443_p2 = scmp.lt.s32.totalorder %s437_s25, %s437_s25 }
   0xf   :  { %399 = vmatpush3.bf16.msra.mxu1 %v396_v15 }
  0x10   :  { %401 = vmatprep.subr.bf16.mxu1 %v400_v19  ;;  %p444_p3 = por %p443_p2, %p442_p1 }
  0x12   :  { %p445_p4 = pnand %p444_p3, %p438_p0 }
  0x13   :  { %403 = vmatpush3.bf16.msra.mxu1 %v400_v19 }
  0x14   :  { %405 = vmatprep.subr.bf16.mxu1 %v404_v22 }
  0x17   :  { %407 = vmatpush3.bf16.msra.mxu1 %v404_v22 }
  0x18   :  { %409 = vmatprep.subr.bf16.mxu1 %v408_v25 }
  0x1b   :  { %411 = vmatpush3.bf16.msra.mxu1 %v408_v25 }
  0x1c   :  { %413 = vmatprep.subr.bf16.mxu1 %v412_v28 }
  0x1f   :  { %415 = vmatpush3.bf16.msra.mxu1 %v412_v28 }
  0x20   :  { %417 = vmatprep.subr.bf16.mxu1 %v416_v31 }
  0x23   :  { %419 = vmatpush3.bf16.msra.mxu1 %v416_v31 }
  0xdf   :  { %v344_v33 = vpop.f32.mrb[0].mxu0 }
  0xe0   :  { %v119_v34 = vadd.f32 %v344_v33, %v306_v32  ;;  %v113_v35 = vpop.f32.mrb[1].mxu0 }
  0xe1   :  { %v114_v36 = vadd.f32 %v306_v32, %v113_v35 }
  0xe2   :  { %425 = vtanh.f32 %v119_v34 }
  0xe3   :  { %427 = vtanh.f32 %v114_v36 }
  0xec   :  { %v426_v38 = vpop.eup %425 }
  0xed   :  { %v428_v40 = vpop.eup %427  ;;  %v127_v42 = vadd.f32 %v426_v38, %v125_v39 }
  0xee   :  { %v126_v41 = vadd.f32 %v428_v40, %v124_v37 }
  0xf0   :  { %377 = vmatprep.mubr.f32.mxu1 %v126_v41 }
  0xf1   :  { %378 = vmatmul.mubr.f32.vlgmr.msra.gmra.mrb[0].mxu1 %v127_v42 }
 0x1c4   :  { %v379_v44 = vpop.f32.mrb[0].mxu1 }
 0x1c5   :  { %v610_v45 = vadd.f32 %v379_v44, %v309_v43  ;;  %v217_v46 = vpop.f32.mrb[1].mxu1 }
 0x1c6   :  { %v218_v47 = vadd.f32 %v309_v43, %v217_v46 }
 0x1c7   :  { %v235_v48 = vand.u32 2147483647, %v610_v45  ;;  %227 = vst.msk [vmem:[#allocation2 + $0x8] sm:$0xff] %vm40_vm0, %v610_v45 }
 0x1c8   :  { %v234_v49 = vand.u32 2147483647, %v218_v47  ;;  %226 = vst.msk [vmem:[#allocation2] sm:$0xff] %vm40_vm0, %v218_v47 }
 0x1c9   :  { %v237_v50 = vsub.f32 0.0, %v235_v48 }
 0x1ca   :  { %v236_v51 = vsub.f32 0.0, %v234_v49 }
 0x1cb   :  { %v240_v52 = vmul.f32 1.442695, %v237_v50 }
 0x1cc   :  { %v238_v53 = vmul.f32 1.442695, %v236_v51 }
 0x1cd   :  { %429 = vpow2.f32 %v240_v52 }
 0x1ce   :  { %431 = vpow2.f32 %v238_v53 }
 0x1d7   :  { %v430_v54 = vpop.eup %429 }
 0x1d8   :  { %v432_v55 = vpop.eup %431  ;;  %v251_v56 = vadd.f32 1.0, %v430_v54  ;;  %v254_v59 = vmul.f32 -0.5, %v430_v54  ;;  %v257_v63 = vand.u32 2147483647, %v430_v54 }
 0x1d9   :  { %v242_v57 = vadd.f32 1.0, %v432_v55  ;;  %v245_v58 = vmul.f32 -0.5, %v432_v55  ;;  %v248_v62 = vand.u32 2147483647, %v432_v55 }
 0x1da   :  { %433 = vlog2.f32 %v251_v56  ;;  %v255_v61 = vadd.f32 1.0, %v254_v59 }
 0x1db   :  { %435 = vlog2.f32 %v242_v57  ;;  %v246_v60 = vadd.f32 1.0, %v245_v58 }
 0x1e4   :  { %v434_v0 = vpop.eup %433 }
 0x1e5   :  { %v436_v1 = vpop.eup %435  ;;  %v253_v2 = vmul.f32 0.6931472, %v434_v0 }
 0x1e6   :  { %448 = shalt.err (!%p445_p4)
}
 0x1e7   :  { %s449_s28 = scalar_lea.hbm %s658_s6, 256 }
 0x1e8   :  { %p450_p5 = scmp.ne.s32.totalorder %s658_s6, %s449_s28  ;;  %p453_p6 = scmp.lt.u32.totalorder %s449_s28, %s658_s6 }
 0x1ea   :  { %p455_p7 = pnand %p453_p6, %p450_p5 }
 0x1ec   :  { %458 = shalt.err (!%p455_p7)
}
 0x1ed   :  { %s486_s9 = smov 128   ;;  %s487_s10 = smov 8   ;;  %v244_v3 = vmul.f32 0.6931472, %v436_v1  ;;  %v247_v4 = vmul.f32 %v432_v55, %v246_v60  ;;  %v256_v5 = vmul.f32 %v430_v54, %v255_v61  ;;  %v228_v6 = vmax.f32 %v218_v47, 0.0 }
 0x1ee   :  { %285 = dma.vmem_to_hbm [thread:$0]  %s280_s5, 256, %s658_s6, [#allocation3], %s486_s9, %s486_s9, %s487_s10   ;;  %vm249_vm1 = vcmp.lt.f32.partialorder %v248_v62, 0.0004427343  ;;  %vm258_vm2 = vcmp.lt.f32.partialorder %v257_v63, 0.0004427343  ;;  %vm230_vm3 = vcmp.ne.f32.partialorder %v218_v47, %v218_v47  ;;  %vm231_vm4 = vcmp.ne.f32.partialorder %v610_v45, %v610_v45 }
 0x1ef   :  { %v250_v7 = vsel %vm249_vm1, %v247_v4, %v244_v3  ;;  %v259_v8 = vsel %vm258_vm2, %v256_v5, %v253_v2  ;;  %v229_v10 = vmax.f32 %v610_v45, 0.0  ;;  %s488_s13 = smov 96   ;;  %s489_s6 = smov [#allocation4]  }
 0x1f0   :  { %v260_v9 = vadd.f32 %v250_v7, %v228_v6  ;;  %s291_s14 = sshll.u32 %s489_s6, 4  ;;  %s292_s14 = int_to_ptr.vmem [resolvable:$true] %s291_s14 }
 0x1f1   :  { %v261_v12 = vadd.f32 %v259_v8, %v229_v10  ;;  %s459_s15 = scalar_lea.vmem %s292_s14, 256  ;;  %p464_p9 = scmp.lt.s32.totalorder %s292_s14, %s292_s14 }
 0x1f2   :  { %v262_v11 = vsel %vm230_vm3, %v218_v47, %v260_v9  ;;  %p460_p8 = scmp.ne.s32.totalorder %s292_s14, %s459_s15  ;;  %p465_p10 = scmp.lt.s32.totalorder %s459_s15, %s459_s15 }
 0x1f3   :  { %266 = vrot.lane.b32.xlu0 %v262_v11, %s488_s13  ;;  %v263_v13 = vsel %vm231_vm4, %v610_v45, %v261_v12 }
 0x1f4   :  { %p466_p11 = por %p465_p10, %p464_p9 }
 0x1f6   :  { %p467_p12 = pnand %p466_p11, %p460_p8 }
 0x1f7   :  { %268 = vrot.lane.b32.xlu0 %v263_v13, %s488_s13 }
 0x265   :  { %v267_v14 = vpop.permute.xlu0 %266 }
 0x266   :  { %272 = vst.msk [vmem:[#allocation4] sm:$0xff] %vm40_vm0, %v267_v14 }
 0x269   :  { %v269_v15 = vpop.permute.xlu0 %268 }
 0x26a   :  { %273 = vst.msk [vmem:[#allocation4 + $0x8] sm:$0xff] %vm40_vm0, %v269_v15 }
 0x26b   :  { %470 = shalt.err (!%p467_p12)
}
 0x26c   :  { %s471_s17 = scalar_lea.hbm %s659_s7, 256 }
 0x26d   :  { %p472_p13 = scmp.ne.s32.totalorder %s659_s7, %s471_s17  ;;  %p475_p0 = scmp.lt.u32.totalorder %s471_s17, %s659_s7 }
 0x26f   :  { %p477_p1 = pnand %p475_p0, %p472_p13 }
 0x271   :  { %480 = shalt.err (!%p477_p1)
}
 0x272   :  { %297 = dma.vmem_to_hbm [thread:$0]  %s292_s14, 256, %s659_s7, [#allocation5], %s486_s9, %s486_s9, %s487_s10  }
 0x273   :  { %481 = dma.done.wait [#allocation3], 256  }
 0x274   :  { %482 = vsyncadd [#allocation3], 4294967040 }
 0x275   :  { %483 = dma.done.wait [#allocation5], 256  }
 0x276   :  { %484 = vsyncadd [#allocation5], 4294967040 }
 0x277   :  { %304 = vsyncpa [#allocation3], 1 }
 0x278   :  { %305 = vsyncpa [#allocation5], 1 }

</bundles_post_ra>
